<compile_context>
chip_gen: v7x
topology: tpu7x:2x2x1
jax: 0.10.0
libtpu: 0.0.40
codegen_flags: <defaults>
</compile_context>

<pallas_src>
import functools

import jax
import jax.numpy as jnp
from jax.experimental import pallas as pl
from jax.experimental.pallas import tpu as pltpu

_RANK_PAD = 128               # LoRA rank padded to one full lane width
_VMEM_LIMIT = 48 * 1024 * 1024  # safe on v7x (64 MiB physical), fine on v5e/v6e


def _round_up(x, m):
    return (x + m - 1) // m * m


def _pick_tile(dim, cap, step):
    """Largest multiple of `step` that is <= cap and divides `dim`.

    `dim` must already be a multiple of `step`, so `step` is always valid.
    """
    cap = min(cap, dim)
    best = step
    t = step
    while t <= cap:
        if dim % t == 0:
            best = t
        t += step
    return best


def _pad_to(a, rows, cols, dtype):
    a = a.astype(dtype)
    if a.shape == (rows, cols):
        return a
    return jnp.zeros((rows, cols), dtype).at[:a.shape[0], :a.shape[1]].set(a)


# --------------------------------------------------------------------------
# Pass 1: LoRA down-projection  lora_mid = x @ A^T   (rank padded to 128)
# --------------------------------------------------------------------------
def _lora_down_kernel(x_ref, a_ref, o_ref, acc_ref):
    kk = pl.program_id(1)

    @pl.when(kk == 0)
    def _():
        acc_ref[...] = jnp.zeros_like(acc_ref)

    acc_ref[...] += jnp.dot(x_ref[...], a_ref[...],
                            preferred_element_type=jnp.float32)

    @pl.when(kk == pl.num_programs(1) - 1)
    def _():
        o_ref[...] = acc_ref[...].astype(o_ref.dtype)


# --------------------------------------------------------------------------
# Pass 2: main matmul + epilogue  y = x @ W^T + b + lora_mid @ (B^T * scale)
# --------------------------------------------------------------------------
def _lora_main_kernel(x_ref, w_ref, b_ref, mid_ref, bl_ref, o_ref, acc_ref):
    kk = pl.program_id(2)

    @pl.when(kk == 0)
    def _():
        acc_ref[...] = jnp.zeros_like(acc_ref)

    # Base path partial product on the MXU, f32 accumulation.
    acc_ref[...] += jnp.dot(x_ref[...], w_ref[...],
                            preferred_element_type=jnp.float32)

    @pl.when(kk == pl.num_programs(2) - 1)
    def _():
        # Once per output tile: up-project the precomputed LoRA intermediate
        # (scale already folded into B^T), add bias, single cast at the store.
        lora_out = jnp.dot(mid_ref[...], bl_ref[...],
                           preferred_element_type=jnp.float32)
        o_ref[...] = (acc_ref[...] + b_ref[...] + lora_out).astype(o_ref.dtype)


# --------------------------------------------------------------------------
# Wrapper
# --------------------------------------------------------------------------
def prepare_lora_params(weight, bias, lora_A, lora_B, alpha=32, rank=4,
                        compute_dtype=jnp.bfloat16, tn_cap=512, tk_cap=2048):
    """One-time prep of the frozen/LoRA weights (transpose, pad, fold scale)."""
    out_features, in_features = weight.shape
    k_pad = _round_up(in_features, 128)
    n_pad = _round_up(out_features, 128)
    tk = _pick_tile(k_pad, tk_cap, 128)
    tn = _pick_tile(n_pad, tn_cap, 128)
    scale = float(alpha) / float(rank)

    wt = _pad_to(weight.T, k_pad, n_pad, compute_dtype)                  # W^T
    at = _pad_to(lora_A.T, k_pad, _RANK_PAD, compute_dtype)              # A^T
    bt = _pad_to(lora_B.T.astype(jnp.float32) * scale,                   # B^T*s
                 _RANK_PAD, n_pad, compute_dtype)
    if bias is None:
        bp = jnp.zeros((1, n_pad), jnp.float32)
    else:
        bp = _pad_to(bias.astype(jnp.float32)[None, :], 1, n_pad, jnp.float32)

    return dict(wt=wt, at=at, bt=bt, bp=bp,
                k=in_features, n=out_features, k_pad=k_pad, n_pad=n_pad,
                tk=tk, tn=tn, compute_dtype=compute_dtype)


def lora_linear_apply(x, params, tm_cap=512):
    """x: (..., in_features) -> (..., out_features) using prepared params."""
    k, n = params["k"], params["n"]
    k_pad, n_pad = params["k_pad"], params["n_pad"]
    tk, tn = params["tk"], params["tn"]
    cdt = params["compute_dtype"]
    wt, at, bt, bp = params["wt"], params["at"], params["bt"], params["bp"]

    lead_shape = x.shape[:-1]
    out_dtype = x.dtype

    x2d = x.reshape(-1, k)
    m = x2d.shape[0]
    m_pad = _round_up(m, 16)
    tm = _pick_tile(m_pad, tm_cap, 16)

    if (m_pad, k_pad) == (m, k):
        xp = x2d.astype(cdt)                       # already aligned: no pad copy
    else:
        xp = jnp.zeros((m_pad, k_pad), cdt).at[:m, :k].set(x2d.astype(cdt))

    # ---- pass 1: lora_mid = x @ A^T --------------------------------------
    down_cost = pl.CostEstimate(
        flops=2 * m_pad * k_pad * _RANK_PAD,
        transcendentals=0,
        bytes_accessed=(xp.size + at.size + m_pad * _RANK_PAD) * 2)
    lora_mid = pl.pallas_call(
        _lora_down_kernel,
        out_shape=jax.ShapeDtypeStruct((m_pad, _RANK_PAD), cdt),
        grid_spec=pltpu.PrefetchScalarGridSpec(
            num_scalar_prefetch=0,
            grid=(m_pad // tm, k_pad // tk),
            in_specs=[
                pl.BlockSpec((tm, tk), lambda i, kk: (i, kk)),           # x
                pl.BlockSpec((tk, _RANK_PAD), lambda i, kk: (kk, 0)),    # A^T
            ],
            out_specs=pl.BlockSpec((tm, _RANK_PAD), lambda i, kk: (i, 0)),
            scratch_shapes=[pltpu.VMEM((tm, _RANK_PAD), jnp.float32)],
        ),
        compiler_params=pltpu.CompilerParams(
            dimension_semantics=("parallel", "arbitrary"),
            vmem_limit_bytes=_VMEM_LIMIT),
        cost_estimate=down_cost,
    )(xp, at)

    # ---- pass 2: y = x @ W^T + b + lora_mid @ (B^T * scale) --------------
    main_cost = pl.CostEstimate(
        flops=2 * m_pad * k_pad * n_pad + 2 * m_pad * _RANK_PAD * n_pad,
        transcendentals=0,
        bytes_accessed=(xp.size + wt.size + lora_mid.size + bt.size) * 2
                       + bp.size * 4
                       + m_pad * n_pad * jnp.dtype(out_dtype).itemsize)
    out = pl.pallas_call(
        _lora_main_kernel,
        out_shape=jax.ShapeDtypeStruct((m_pad, n_pad), out_dtype),
        grid_spec=pltpu.PrefetchScalarGridSpec(
            num_scalar_prefetch=0,
            grid=(m_pad // tm, n_pad // tn, k_pad // tk),
            in_specs=[
                pl.BlockSpec((tm, tk), lambda i, j, kk: (i, kk)),          # x
                pl.BlockSpec((tk, tn), lambda i, j, kk: (kk, j)),          # W^T
                pl.BlockSpec((1, tn), lambda i, j, kk: (0, j)),            # bias
                pl.BlockSpec((tm, _RANK_PAD), lambda i, j, kk: (i, 0)),    # mid
                pl.BlockSpec((_RANK_PAD, tn), lambda i, j, kk: (0, j)),    # B^T*s
            ],
            out_specs=pl.BlockSpec((tm, tn), lambda i, j, kk: (i, j)),
            scratch_shapes=[pltpu.VMEM((tm, tn), jnp.float32)],
        ),
        compiler_params=pltpu.CompilerParams(
            dimension_semantics=("parallel", "parallel", "arbitrary"),
            vmem_limit_bytes=_VMEM_LIMIT),
        cost_estimate=main_cost,
    )(xp, wt, bp, lora_mid, bt)

    return out[:m, :n].reshape(*lead_shape, n)


def lora_linear_forward(x, weight, bias, lora_A, lora_B, alpha=32, rank=4,
                        compute_dtype=jnp.bfloat16,
                        tm_cap=512, tn_cap=512, tk_cap=2048):
    params = prepare_lora_params(weight, bias, lora_A, lora_B, alpha, rank,
                                 compute_dtype, tn_cap, tk_cap)
    return lora_linear_apply(x, params, tm_cap)


# --------------------------------------------------------------------------
# Self-test
# --------------------------------------------------------------------------
def _quantized_reference(x, weight, bias, lora_A, lora_B, alpha, rank):
    """Pure-JAX reference with the same bf16 operand quantization / f32 accum."""
    bf = lambda t: t.astype(jnp.bfloat16).astype(jnp.float32)
    scale = alpha / rank
    xq = bf(x)
    base = xq @ bf(weight).T + bias.astype(jnp.float32)
    mid = bf(xq @ bf(lora_A).T)                 # kernel stores lora_mid in bf16
    lora = mid @ bf(lora_B.T.astype(jnp.float32) * scale)
    return base + lora


def _run_case(key, batch, seq, in_features, out_features, rank, alpha,
              tm_cap, tn_cap, tk_cap):
    k_x, k_w, k_b, k_a, k_lb = jax.random.split(key, 5)
    x = jax.random.normal(k_x, (batch, seq, in_features), dtype=jnp.float32)
    weight = jax.random.normal(k_w, (out_features, in_features),
                               dtype=jnp.float32) * 0.1
    bias = jax.random.normal(k_b, (out_features,), dtype=jnp.float32) * 0.1
    lora_A = jax.random.normal(k_a, (rank, in_features), dtype=jnp.float32) * 0.02
    # NOTE: the module initializes lora_B to zeros; use a nonzero B here so the
    # LoRA branch (and the alpha/rank scaling) is actually exercised.
    lora_B = jax.random.normal(k_lb, (out_features, rank),
                               dtype=jnp.float32) * 0.02

    params = prepare_lora_params(weight, bias, lora_A, lora_B, alpha, rank,
                                 tn_cap=tn_cap, tk_cap=tk_cap)
    y = lora_linear_apply(x, params, tm_cap=tm_cap)
    y = jax.block_until_ready(y)

    ref = _quantized_reference(x, weight, bias, lora_A, lora_B, alpha, rank)
    assert y.shape == (batch, seq, out_features), y.shape
    err = float(jnp.max(jnp.abs(y - ref)))
    assert jnp.allclose(y, ref, atol=2e-2, rtol=2e-2), f"max abs err {err}"


if __name__ == "__main__":
    # Case 1: small shapes consistent with the module
    # (Linear(in=32, out=32), rank=4, alpha=32, x: (batch=2, seq=8, hidden=32)).
    _run_case(jax.random.PRNGKey(0), batch=2, seq=8,
              in_features=32, out_features=32, rank=4, alpha=32,
              tm_cap=512, tn_cap=512, tk_cap=2048)

    # Case 2: modest multi-tile shapes with small tile caps so every grid axis
    # (M, N, K) runs >1 step — exercises the k accumulator init/epilogue and
    # the pipelined BlockSpec paths that case 1's (1,1,1) grid does not.
    _run_case(jax.random.PRNGKey(0), batch=2, seq=72,
              in_features=384, out_features=320, rank=4, alpha=32,
              tm_cap=48, tn_cap=128, tk_cap=128)

    print("KERNEL_OK")
</pallas_src>

<mosaic_0001>
module attributes {stable_mosaic.version = 11 : i64} {
  func.func @_lora_down_kernel(%arg0: i32, %arg1: i32, %arg2: memref<16x128xbf16, #tpu.memory_space<vmem>>, %arg3: memref<128x128xbf16, #tpu.memory_space<vmem>>, %arg4: memref<16x128xbf16, #tpu.memory_space<vmem>>, %arg5: memref<16x128xf32, #tpu.memory_space<vmem>>) attributes {dimension_semantics = [#tpu.dimension_semantics<parallel>, #tpu.dimension_semantics<arbitrary>], iteration_bounds = array<i64: 1, 1>, scalar_prefetch = 0 : i64, scratch_operands = 1 : i64, tpu.core_type = #tpu.core_type<tc>, window_params = [{transform_indices = @transform_0, window_bounds = array<i64: 16, 128>}, {transform_indices = @transform_1, window_bounds = array<i64: 128, 128>}, {transform_indices = @transform_2, window_bounds = array<i64: 16, 128>}]} {
    %c0_i32 = arith.constant 0 : i32
    %0 = arith.cmpi eq, %arg1, %c0_i32 : i32
    %1 = arith.extui %0 : i1 to i32
    %c0_i32_0 = arith.constant 0 : i32
    %2 = arith.cmpi ne, %1, %c0_i32_0 : i32
    scf.if %2 {
      %cst_10 = arith.constant 0.000000e+00 : f32
      %12 = vector.broadcast %cst_10 : f32 to vector<16x128xf32>
      %c0_11 = arith.constant 0 : index
      %c0_12 = arith.constant 0 : index
      %13 = vector.load %arg5[%c0_11, %c0_12] : memref<16x128xf32, #tpu.memory_space<vmem>>, vector<16x128xf32>
      tpu.vector_store %arg5[%c0_11, %c0_12], %12 {strides = array<i32>} : memref<16x128xf32, #tpu.memory_space<vmem>>, vector<16x128xf32>,
    } else {
    }
    %c0 = arith.constant 0 : index
    %c0_1 = arith.constant 0 : index
    %3 = vector.load %arg5[%c0, %c0_1] : memref<16x128xf32, #tpu.memory_space<vmem>>, vector<16x128xf32>
    %c0_2 = arith.constant 0 : index
    %c0_3 = arith.constant 0 : index
    %4 = vector.load %arg2[%c0_2, %c0_3] : memref<16x128xbf16, #tpu.memory_space<vmem>>, vector<16x128xbf16>
    %c0_4 = arith.constant 0 : index
    %c0_5 = arith.constant 0 : index
    %5 = vector.load %arg3[%c0_4, %c0_5] : memref<128x128xbf16, #tpu.memory_space<vmem>>, vector<128x128xbf16>
    %cst = arith.constant dense<0.000000e+00> : vector<16x128xf32>
    %6 = tpu.matmul %4, %5, %cst {dimension_numbers = #tpu.dot_dimension_numbers<[1], [0], [0], [1], [0, 0, 1, 1], [], []>} : vector<16x128xbf16>, vector<128x128xbf16>, vector<16x128xf32> -> vector<16x128xf32>
    %7 = arith.addf %3, %6 : vector<16x128xf32>
    %c0_6 = arith.constant 0 : index
    %c0_7 = arith.constant 0 : index
    %8 = vector.load %arg5[%c0_6, %c0_7] : memref<16x128xf32, #tpu.memory_space<vmem>>, vector<16x128xf32>
    tpu.vector_store %arg5[%c0_6, %c0_7], %7 {strides = array<i32>} : memref<16x128xf32, #tpu.memory_space<vmem>>, vector<16x128xf32>,
    %c0_i32_8 = arith.constant 0 : i32
    %9 = arith.cmpi eq, %arg1, %c0_i32_8 : i32
    %10 = arith.extui %9 : i1 to i32
    %c0_i32_9 = arith.constant 0 : i32
    %11 = arith.cmpi ne, %10, %c0_i32_9 : i32
    scf.if %11 {
      %c0_10 = arith.constant 0 : index
      %c0_11 = arith.constant 0 : index
      %12 = vector.load %arg5[%c0_10, %c0_11] : memref<16x128xf32, #tpu.memory_space<vmem>>, vector<16x128xf32>
      %13 = arith.truncf %12 : vector<16x128xf32> to vector<16x128xbf16>
      %c0_12 = arith.constant 0 : index
      %c0_13 = arith.constant 0 : index
      %14 = vector.load %arg4[%c0_12, %c0_13] : memref<16x128xbf16, #tpu.memory_space<vmem>>, vector<16x128xbf16>
      tpu.vector_store %arg4[%c0_12, %c0_13], %13 {strides = array<i32>} : memref<16x128xbf16, #tpu.memory_space<vmem>>, vector<16x128xbf16>,
    } else {
    }
    return
  }
  func.func @transform_0(%arg0: i32, %arg1: i32) -> (i32, i32) {
    %c0_i32 = arith.constant 0 : i32
    return %arg0, %arg1 : i32, i32
  }
  func.func @transform_1(%arg0: i32, %arg1: i32) -> (i32, i32) {
    %c0_i32 = arith.constant 0 : i32
    %c0_i32_0 = arith.constant 0 : i32
    return %arg1, %c0_i32 : i32, i32
  }
  func.func @transform_2(%arg0: i32, %arg1: i32) -> (i32, i32) {
    %c0_i32 = arith.constant 0 : i32
    %c0_i32_0 = arith.constant 0 : i32
    return %arg0, %c0_i32 : i32, i32
  }
}

</mosaic_0001>

<bundles_post_ra>
// kernel: tpu_custom_call.1
= control target key start
LH: loop header
LB: loop body
LE: loop exit
PB: predicated region body
PF: predicated region fallthrough
CT: control target
= control target key end

     0   :  { %7 = vsyncpa [#allocation4], 0  ;;  %s401_s0 = inlined_call_operand.hbm [shape: bf16[16,128], index: 0, kind: input, shape index: {}]   ;;  %s402_s1 = inlined_call_operand.hbm [shape: bf16[128,128], index: 1, kind: input, shape index: {}]   ;;  %s403_s2 = inlined_call_operand.hbm [shape: bf16[16,128], index: 2, kind: output, shape index: {}]  }
   0x1   :  { %8 = vsyncpa [#allocation7], 0 }
   0x2   :  { %9 = vsyncpa [#allocation5], 0  ;;  %s334_s9 = smov [#allocation3]   ;;  %s262_s13 = scalar_lea.hbm %s401_s0, 128 }
   0x3   :  { %s15_s10 = sshll.u32 %s334_s9, 4  ;;  %p263_p0 = scmp.ne.s32.totalorder %s401_s0, %s262_s13  ;;  %s16_s10 = int_to_ptr.vmem [resolvable:$true] %s15_s10 }
   0x4   :  { %p266_p1 = scmp.lt.u32.totalorder %s262_s13, %s401_s0 }
   0x6   :  { %p268_p2 = pnand %p266_p1, %p263_p0 }
   0x8   :  { %271 = shalt.err (!%p268_p2)
}
   0x9   :  { %s272_s18 = scalar_lea.vmem %s16_s10, 128  ;;  %p277_p4 = scmp.lt.s32.totalorder %s16_s10, %s16_s10 }
   0xa   :  { %p273_p3 = scmp.ne.s32.totalorder %s16_s10, %s272_s18  ;;  %p278_p5 = scmp.lt.s32.totalorder %s272_s18, %s272_s18 }
   0xc   :  { %p279_p6 = por %p278_p5, %p277_p4 }
   0xe   :  { %p280_p7 = pnand %p279_p6, %p273_p3 }
  0x10   :  { %283 = shalt.err (!%p280_p7)
}
  0x11   :  { %s335_s19 = smov 64   ;;  %s336_s20 = smov 4  }
  0x12   :  { %21 = dma.hbm_to_vmem [thread:$0]  %s401_s0, 128, %s16_s10, [#allocation4], %s335_s19, %s335_s19, %s336_s20  }
  0x13   :  { %s337_s23 = smov [#allocation6]   ;;  %s284_s27 = scalar_lea.hbm %s402_s1, 1024 }
  0x14   :  { %s27_s24 = sshll.u32 %s337_s23, 4  ;;  %p285_p8 = scmp.ne.s32.totalorder %s402_s1, %s284_s27  ;;  %s28_s24 = int_to_ptr.vmem [resolvable:$true] %s27_s24 }
  0x15   :  { %p288_p9 = scmp.lt.u32.totalorder %s284_s27, %s402_s1 }
  0x17   :  { %p290_p10 = pnand %p288_p9, %p285_p8 }
  0x19   :  { %293 = shalt.err (!%p290_p10)
}
  0x1a   :  { %s294_s4 = scalar_lea.vmem %s28_s24, 1024  ;;  %p299_p12 = scmp.lt.s32.totalorder %s28_s24, %s28_s24 }
  0x1b   :  { %p295_p11 = scmp.ne.s32.totalorder %s28_s24, %s294_s4  ;;  %p300_p13 = scmp.lt.s32.totalorder %s294_s4, %s294_s4 }
  0x1d   :  { %p301_p0 = por %p300_p13, %p299_p12 }
  0x1f   :  { %p302_p1 = pnand %p301_p0, %p295_p11 }
  0x21   :  { %305 = shalt.err (!%p302_p1)
}
  0x22   :  { %33 = dma.hbm_to_vmem [thread:$0]  %s402_s1, 1024, %s28_s24, [#allocation7], %s335_s19, %s335_s19, %s336_s20  }
  0x23   :  { %328 = dma.done.wait [#allocation4], 128  }
  0x24   :  { %329 = vsyncadd [#allocation4], 4294967168 }
  0x25   :  { %330 = dma.done.wait [#allocation7], 1024  }
  0x26   :  { %331 = vsyncadd [#allocation7], 4294966272  ;;  %v338_v0 = vmov 0.0   ;;  %vm339_vm0 = vmmov 0   ;;  %v253_v1 = vld [vmem:[#allocation6] sm:$0xff]   ;;  %v254_v2 = vld [vmem:[#allocation6 + $0x8] sm:$0xff]  }
  0x27   :  { %226 = vmatprep.subr.bf16.mxu0 %v338_v0  ;;  %242 = vmatprep.mubr.msk.bf16.mxu0 %vm339_vm0, %v338_v0  ;;  %v255_v3 = vld [vmem:[#allocation6 + $0x10] sm:$0xff]   ;;  %v256_v4 = vld [vmem:[#allocation6 + $0x18] sm:$0xff]   ;;  %v257_v5 = vld [vmem:[#allocation6 + $0x20] sm:$0xff]   ;;  %s340_s1 = smov [#allocation8]  }
  0x28   :  { %227 = vmatpush3.bf16.msra.mxu0 %v253_v1  ;;  %v258_v6 = vld [vmem:[#allocation6 + $0x28] sm:$0xff]   ;;  %v259_v7 = vld [vmem:[#allocation6 + $0x30] sm:$0xff]   ;;  %v260_v8 = vld [vmem:[#allocation6 + $0x38] sm:$0xff]   ;;  %s186_s6 = sshll.u32 %s340_s1, 4  ;;  %s187_s6 = int_to_ptr.vmem [resolvable:$true] %s186_s6 }
  0x29   :  { %228 = vmatprep.subr.bf16.mxu0 %v338_v0  ;;  %v261_v9 = vld [vmem:[#allocation3] sm:$0xff]   ;;  %s306_s7 = scalar_lea.vmem %s187_s6, 128  ;;  %p311_p3 = scmp.lt.s32.totalorder %s187_s6, %s187_s6 }
  0x2a   :  { %p307_p2 = scmp.ne.s32.totalorder %s187_s6, %s306_s7  ;;  %p312_p4 = scmp.lt.s32.totalorder %s306_s7, %s306_s7 }
  0x2c   :  { %229 = vmatpush3.bf16.msra.mxu0 %v254_v2  ;;  %p313_p5 = por %p312_p4, %p311_p3 }
  0x2d   :  { %230 = vmatprep.subr.bf16.mxu0 %v338_v0 }
  0x2e   :  { %p314_p6 = pnand %p313_p5, %p307_p2 }
  0x30   :  { %231 = vmatpush3.bf16.msra.mxu0 %v255_v3 }
  0x31   :  { %232 = vmatprep.subr.bf16.mxu0 %v338_v0 }
  0x34   :  { %233 = vmatpush3.bf16.msra.mxu0 %v256_v4 }
  0x35   :  { %234 = vmatprep.subr.bf16.mxu0 %v338_v0 }
  0x38   :  { %235 = vmatpush3.bf16.msra.mxu0 %v257_v5 }
  0x39   :  { %236 = vmatprep.subr.bf16.mxu0 %v338_v0 }
  0x3c   :  { %237 = vmatpush3.bf16.msra.mxu0 %v258_v6 }
  0x3d   :  { %238 = vmatprep.subr.bf16.mxu0 %v338_v0 }
  0x40   :  { %239 = vmatpush3.bf16.msra.mxu0 %v259_v7 }
  0x41   :  { %240 = vmatprep.subr.bf16.mxu0 %v338_v0 }
  0x44   :  { %241 = vmatpush3.bf16.msra.mxu0 %v260_v8 }
  0x47   :  { %243 = vmatmul.mubr.bf16.vlgmr.msra.gmra.mrb[0].mxu0 %v261_v9 }
 0x11a   :  { %v155_v10 = vpop.f32.mrb[0].mxu0 }
 0x11b   :  { %v244_v11 = vpop.f32.mrb[1].mxu0 }
 0x11c   :  { %v158_v12 = vpop.f32.mrb[2].mxu0 }
 0x11d   :  { %v215_v13 = vpack.c.bf16 %v158_v12, %v155_v10  ;;  %v245_v14 = vpop.f32.mrb[3].mxu0 }
 0x11f   :  { %216 = vst [vmem:[#allocation8] sm:$0xff] %v215_v13  }
 0x120   :  { %317 = shalt.err (!%p314_p6)
}
 0x121   :  { %s318_s10 = scalar_lea.hbm %s403_s2, 128 }
 0x122   :  { %p319_p7 = scmp.ne.s32.totalorder %s403_s2, %s318_s10  ;;  %p322_p8 = scmp.lt.u32.totalorder %s318_s10, %s403_s2 }
 0x124   :  { %p324_p9 = pnand %p322_p8, %p319_p7 }
 0x126   :  { %327 = shalt.err (!%p324_p9)
}
 0x127   :  { %192 = dma.vmem_to_hbm [thread:$0]  %s187_s6, 128, %s403_s2, [#allocation5], %s335_s19, %s335_s19, %s336_s20  }
 0x128   :  { %332 = dma.done.wait [#allocation5], 128  }
 0x129   :  { %333 = vsyncadd [#allocation5], 4294967168 }
 0x12a   :  { %196 = vsyncpa [#allocation4], 1 }
 0x12b   :  { %197 = vsyncpa [#allocation7], 1 }
 0x12c   :  { %198 = vsyncpa [#allocation5], 1 }

</bundles_post_ra>
